<compile_context>
chip_gen: v7x
topology: tpu7x:2x2x1
jax: 0.10.0
libtpu: 0.0.40
codegen_flags: <defaults>
</compile_context>

<pallas_src>
import functools

import jax
import jax.numpy as jnp
from jax.experimental import pallas as pl
from jax.experimental.pallas import tpu as pltpu

ACTION_BOUND = 1.0


def _round_up(x, m):
    return (x + m - 1) // m * m


def _softplus(z):
    # numerically stable softplus: log(1 + exp(z))
    return jnp.log1p(jnp.exp(-jnp.abs(z))) + jnp.maximum(z, 0.0)


def actor_critic_kernel(x_ref, w1_ref, w2_ref, wh_ref, b_ref, out_ref, *, num_action):
    n_latent = w1_ref.shape[1]
    head_width = wh_ref.shape[1]

    # Packed biases: row 0 = b1, row 1 = b2, row 2 = [bmu | bstd | bv | 0...].
    b1 = b_ref[0:1, :n_latent]
    b2 = b_ref[1:2, :n_latent]
    bh = b_ref[2:3, :head_width]

    x = x_ref[...]

    # Shared trunk: fc1 -> relu -> fc2 -> relu.
    h1 = jnp.maximum(
        jnp.dot(x, w1_ref[...], preferred_element_type=jnp.float32) + b1, 0.0)
    h2 = jnp.maximum(
        jnp.dot(h1, w2_ref[...], preferred_element_type=jnp.float32) + b2, 0.0)

    # Single fused head matmul: columns [0,A) = mu, [A,2A) = std, [2A,2A+1) = v.
    heads = jnp.dot(h2, wh_ref[...], preferred_element_type=jnp.float32) + bh

    # Per-column activation selection via lane masks (whole-vreg elementwise;
    # tanh/exp run on the otherwise-idle EUP, so computing them on all lanes is free).
    col = jax.lax.broadcasted_iota(jnp.int32, heads.shape, dimension=1)
    mu_vals = ACTION_BOUND * jnp.tanh(heads)
    std_vals = _softplus(heads) + 0.001
    out = jnp.where(col < num_action, mu_vals,
                    jnp.where(col < 2 * num_action, std_vals, heads))

    # Single lane-dense full-width store.
    out_ref[...] = out


def actor_critic_forward(x, packed, *, tile_b=512):
    """x: (B, num_state) f32. packed: dict from pack_params(). Returns (mu, std, v)."""
    B, num_state = x.shape
    w1, w2, wh, b_all = packed["w1"], packed["w2"], packed["wh"], packed["b_all"]
    num_action = packed["num_action"]
    n_latent = w1.shape[1]
    head_width = wh.shape[1]
    bias_width = b_all.shape[1]

    # Batch tile: multiple of 8 sublanes, capped by the (padded) batch.
    tb = min(tile_b, _round_up(B, 8))
    padded_B = _round_up(B, tb)
    if padded_B != B:
        x = jnp.pad(x, ((0, padded_B - B), (0, 0)))

    kernel = functools.partial(actor_critic_kernel, num_action=num_action)

    out = pl.pallas_call(
        kernel,
        out_shape=jax.ShapeDtypeStruct((padded_B, head_width), jnp.float32),
        grid_spec=pltpu.PrefetchScalarGridSpec(
            num_scalar_prefetch=0,
            grid=(padded_B // tb,),
            in_specs=[
                # x tiles stream along the batch grid axis.
                pl.BlockSpec((tb, num_state), lambda i: (i, 0)),
                # Weights / biases: constant block index -> DMA'd once, VMEM-resident.
                pl.BlockSpec((num_state, n_latent), lambda i: (0, 0)),
                pl.BlockSpec((n_latent, n_latent), lambda i: (0, 0)),
                pl.BlockSpec((n_latent, head_width), lambda i: (0, 0)),
                pl.BlockSpec((3, bias_width), lambda i: (0, 0)),
            ],
            out_specs=pl.BlockSpec((tb, head_width), lambda i: (i, 0)),
        ),
        compiler_params=pltpu.CompilerParams(
            # Batch axis is independent -> shard across TensorCores on v7x.
            dimension_semantics=("parallel",),
            # Sized for v7x's 64 MiB VMEM (scoped 32 MiB); tiles here are far smaller.
            vmem_limit_bytes=32 * 1024 * 1024,
        ),
    )(x, w1, w2, wh, b_all)

    mu = out[:B, :num_action]
    std = out[:B, num_action:2 * num_action]
    v = out[:B, 2 * num_action:2 * num_action + 1]
    return mu, std, v


def init_params(key, num_state, num_action, n_latent_var):
    """Deterministic init mimicking nn.Linear default (uniform +/- 1/sqrt(fan_in)).

    Weights are stored transposed relative to PyTorch: (in_features, out_features).
    Biases are stored as (1, out_features).
    """
    def linear(k, fan_in, fan_out):
        kw, kb = jax.random.split(k)
        bound = 1.0 / jnp.sqrt(fan_in)
        w = jax.random.uniform(kw, (fan_in, fan_out), jnp.float32, -bound, bound)
        b = jax.random.uniform(kb, (1, fan_out), jnp.float32, -bound, bound)
        return w, b

    k1, k2, k3, k4, k5 = jax.random.split(key, 5)
    w1, b1 = linear(k1, num_state, n_latent_var)
    w2, b2 = linear(k2, n_latent_var, n_latent_var)
    wmu, bmu = linear(k3, n_latent_var, num_action)
    wstd, bstd = linear(k4, n_latent_var, num_action)
    wv, bv = linear(k5, n_latent_var, 1)
    return {"w1": w1, "b1": b1, "w2": w2, "b2": b2,
            "wmu": wmu, "bmu": bmu, "wstd": wstd, "bstd": bstd,
            "wv": wv, "bv": bv}


def pack_params(raw, num_action, n_latent_var):
    """Pack head weights into one lane-padded matrix and all biases into one array."""
    head_width = max(128, _round_up(2 * num_action + 1, 128))

    wh = jnp.zeros((n_latent_var, head_width), jnp.float32)
    wh = wh.at[:, :num_action].set(raw["wmu"])
    wh = wh.at[:, num_action:2 * num_action].set(raw["wstd"])
    wh = wh.at[:, 2 * num_action:2 * num_action + 1].set(raw["wv"])

    bias_width = max(n_latent_var, head_width)
    b_all = jnp.zeros((3, bias_width), jnp.float32)
    b_all = b_all.at[0, :n_latent_var].set(raw["b1"][0])
    b_all = b_all.at[1, :n_latent_var].set(raw["b2"][0])
    b_all = b_all.at[2, :num_action].set(raw["bmu"][0])
    b_all = b_all.at[2, num_action:2 * num_action].set(raw["bstd"][0])
    b_all = b_all.at[2, 2 * num_action:2 * num_action + 1].set(raw["bv"][0])

    return {"w1": raw["w1"], "w2": raw["w2"], "wh": wh, "b_all": b_all,
            "num_action": num_action}


def reference_forward(x, p):
    """Pure-JAX reference mirroring the PyTorch module exactly."""
    h1 = jnp.maximum(x @ p["w1"] + p["b1"], 0.0)
    h2 = jnp.maximum(h1 @ p["w2"] + p["b2"], 0.0)
    mu = ACTION_BOUND * jnp.tanh(h2 @ p["wmu"] + p["bmu"])
    std = jax.nn.softplus(h2 @ p["wstd"] + p["bstd"]) + 0.001
    v = h2 @ p["wv"] + p["bv"]
    return mu, std, v


# TODO(synk): act()'s Normal sampling / log_prob is host-side RL plumbing, not part
# of the module's forward pass, so it is intentionally not implemented in-kernel.


if __name__ == "__main__":
    num_state, num_action, n_latent_var = 16, 8, 128

    key = jax.random.PRNGKey(0)
    kx, kp = jax.random.split(key)
    raw = init_params(kp, num_state, num_action, n_latent_var)
    packed = pack_params(raw, num_action, n_latent_var)

    # Small batch (grid of 1) and a larger batch exercising the batch grid + padding.
    for batch in (8, 1000):
        x = jax.random.normal(jax.random.fold_in(kx, batch), (batch, num_state),
                              dtype=jnp.float32)
        mu, std, v = actor_critic_forward(x, packed)
        jax.block_until_ready((mu, std, v))

        mu_r, std_r, v_r = reference_forward(x, raw)
        assert mu.shape == (batch, num_action)
        assert std.shape == (batch, num_action)
        assert v.shape == (batch, 1)
        assert jnp.allclose(mu, mu_r, atol=1e-5, rtol=1e-5)
        assert jnp.allclose(std, std_r, atol=1e-5, rtol=1e-5)
        assert jnp.allclose(v, v_r, atol=1e-5, rtol=1e-5)
        assert bool(jnp.all(std > 0.0))

    print("KERNEL_OK")
</pallas_src>

<mosaic_0001>
module attributes {stable_mosaic.version = 11 : i64} {
  func.func @actor_critic_kernel(%arg0: i32, %arg1: memref<8x16xf32, #tpu.memory_space<vmem>>, %arg2: memref<16x128xf32, #tpu.memory_space<vmem>>, %arg3: memref<128x128xf32, #tpu.memory_space<vmem>>, %arg4: memref<128x128xf32, #tpu.memory_space<vmem>>, %arg5: memref<3x128xf32, #tpu.memory_space<vmem>>, %arg6: memref<8x128xf32, #tpu.memory_space<vmem>>) attributes {dimension_semantics = [#tpu.dimension_semantics<parallel>], iteration_bounds = array<i64: 1>, scalar_prefetch = 0 : i64, scratch_operands = 0 : i64, tpu.core_type = #tpu.core_type<tc>, window_params = [{transform_indices = @transform_0, window_bounds = array<i64: 8, 16>}, {pipeline_mode = #tpu.pipeline_mode<synchronous>, transform_indices = @transform_1, window_bounds = array<i64: 16, 128>}, {pipeline_mode = #tpu.pipeline_mode<synchronous>, transform_indices = @transform_2, window_bounds = array<i64: 128, 128>}, {pipeline_mode = #tpu.pipeline_mode<synchronous>, transform_indices = @transform_3, window_bounds = array<i64: 128, 128>}, {pipeline_mode = #tpu.pipeline_mode<synchronous>, transform_indices = @transform_4, window_bounds = array<i64: 3, 128>}, {transform_indices = @transform_5, window_bounds = array<i64: 8, 128>}]} {
    %c0 = arith.constant 0 : index
    %c0_0 = arith.constant 0 : index
    %0 = vector.load %arg5[%c0, %c0_0] : memref<3x128xf32, #tpu.memory_space<vmem>>, vector<1x128xf32>
    %c1 = arith.constant 1 : index
    %c0_1 = arith.constant 0 : index
    %1 = vector.load %arg5[%c1, %c0_1] : memref<3x128xf32, #tpu.memory_space<vmem>>, vector<1x128xf32>
    %c2 = arith.constant 2 : index
    %c0_2 = arith.constant 0 : index
    %2 = vector.load %arg5[%c2, %c0_2] : memref<3x128xf32, #tpu.memory_space<vmem>>, vector<1x128xf32>
    %c0_3 = arith.constant 0 : index
    %c0_4 = arith.constant 0 : index
    %3 = vector.load %arg1[%c0_3, %c0_4] : memref<8x16xf32, #tpu.memory_space<vmem>>, vector<8x16xf32>
    %c0_5 = arith.constant 0 : index
    %c0_6 = arith.constant 0 : index
    %4 = vector.load %arg2[%c0_5, %c0_6] : memref<16x128xf32, #tpu.memory_space<vmem>>, vector<16x128xf32>
    %cst = arith.constant dense<0.000000e+00> : vector<8x128xf32>
    %5 = tpu.matmul %3, %4, %cst {dimension_numbers = #tpu.dot_dimension_numbers<[1], [0], [0], [1], [0, 0, 1, 1], [], []>} : vector<8x16xf32>, vector<16x128xf32>, vector<8x128xf32> -> vector<8x128xf32>
    %6 = vector.broadcast %0 : vector<1x128xf32> to vector<8x128xf32>
    %7 = arith.addf %5, %6 : vector<8x128xf32>
    %cst_7 = arith.constant 0.000000e+00 : f32
    %8 = vector.broadcast %cst_7 : f32 to vector<8x128xf32>
    %9 = arith.maximumf %7, %8 : vector<8x128xf32>
    %c0_8 = arith.constant 0 : index
    %c0_9 = arith.constant 0 : index
    %10 = vector.load %arg3[%c0_8, %c0_9] : memref<128x128xf32, #tpu.memory_space<vmem>>, vector<128x128xf32>
    %cst_10 = arith.constant dense<0.000000e+00> : vector<8x128xf32>
    %11 = tpu.matmul %9, %10, %cst_10 {dimension_numbers = #tpu.dot_dimension_numbers<[1], [0], [0], [1], [0, 0, 1, 1], [], []>} : vector<8x128xf32>, vector<128x128xf32>, vector<8x128xf32> -> vector<8x128xf32>
    %12 = vector.broadcast %1 : vector<1x128xf32> to vector<8x128xf32>
    %13 = arith.addf %11, %12 : vector<8x128xf32>
    %cst_11 = arith.constant 0.000000e+00 : f32
    %14 = vector.broadcast %cst_11 : f32 to vector<8x128xf32>
    %15 = arith.maximumf %13, %14 : vector<8x128xf32>
    %c0_12 = arith.constant 0 : index
    %c0_13 = arith.constant 0 : index
    %16 = vector.load %arg4[%c0_12, %c0_13] : memref<128x128xf32, #tpu.memory_space<vmem>>, vector<128x128xf32>
    %cst_14 = arith.constant dense<0.000000e+00> : vector<8x128xf32>
    %17 = tpu.matmul %15, %16, %cst_14 {dimension_numbers = #tpu.dot_dimension_numbers<[1], [0], [0], [1], [0, 0, 1, 1], [], []>} : vector<8x128xf32>, vector<128x128xf32>, vector<8x128xf32> -> vector<8x128xf32>
    %18 = vector.broadcast %2 : vector<1x128xf32> to vector<8x128xf32>
    %19 = arith.addf %17, %18 : vector<8x128xf32>
    %20 = tpu.iota {dimensions = array<i32: 1>} : vector<8x128xi32>
    %21 = math.tanh %19 : vector<8x128xf32>
    %cst_15 = arith.constant 1.000000e+00 : f32
    %22 = vector.broadcast %cst_15 : f32 to vector<8x128xf32>
    %23 = arith.mulf %22, %21 : vector<8x128xf32>
    %24 = math.absf %19 : vector<8x128xf32>
    %cst_16 = arith.constant 0.000000e+00 : f32
    %25 = vector.broadcast %cst_16 : f32 to vector<8x128xf32>
    %26 = arith.subf %25, %24 : vector<8x128xf32>
    %27 = math.exp %26 : vector<8x128xf32>
    %28 = math.log1p %27 : vector<8x128xf32>
    %cst_17 = arith.constant 0.000000e+00 : f32
    %29 = vector.broadcast %cst_17 : f32 to vector<8x128xf32>
    %30 = arith.maximumf %19, %29 : vector<8x128xf32>
    %31 = arith.addf %28, %30 : vector<8x128xf32>
    %cst_18 = arith.constant 1.000000e-03 : f32
    %32 = vector.broadcast %cst_18 : f32 to vector<8x128xf32>
    %33 = arith.addf %31, %32 : vector<8x128xf32>
    %c8_i32 = arith.constant 8 : i32
    %34 = vector.broadcast %c8_i32 : i32 to vector<8x128xi32>
    %35 = arith.cmpi slt, %20, %34 : vector<8x128xi32>
    %c16_i32 = arith.constant 16 : i32
    %36 = vector.broadcast %c16_i32 : i32 to vector<8x128xi32>
    %37 = arith.cmpi slt, %20, %36 : vector<8x128xi32>
    %38 = arith.select %37, %33, %19 : vector<8x128xi1>, vector<8x128xf32>
    %39 = arith.select %35, %23, %38 : vector<8x128xi1>, vector<8x128xf32>
    %c0_19 = arith.constant 0 : index
    %c0_20 = arith.constant 0 : index
    %40 = vector.load %arg6[%c0_19, %c0_20] : memref<8x128xf32, #tpu.memory_space<vmem>>, vector<8x128xf32>
    tpu.vector_store %arg6[%c0_19, %c0_20], %39 {strides = array<i32>} : memref<8x128xf32, #tpu.memory_space<vmem>>, vector<8x128xf32>,
    return
  }
  func.func @transform_0(%arg0: i32) -> (i32, i32) {
    %c0_i32 = arith.constant 0 : i32
    %c0_i32_0 = arith.constant 0 : i32
    return %arg0, %c0_i32 : i32, i32
  }
  func.func @transform_1(%arg0: i32) -> (i32, i32) {
    %c0_i32 = arith.constant 0 : i32
    %c0_i32_0 = arith.constant 0 : i32
    %c0_i32_1 = arith.constant 0 : i32
    return %c0_i32, %c0_i32_0 : i32, i32
  }
  func.func @transform_2(%arg0: i32) -> (i32, i32) {
    %c0_i32 = arith.constant 0 : i32
    %c0_i32_0 = arith.constant 0 : i32
    %c0_i32_1 = arith.constant 0 : i32
    return %c0_i32, %c0_i32_0 : i32, i32
  }
  func.func @transform_3(%arg0: i32) -> (i32, i32) {
    %c0_i32 = arith.constant 0 : i32
    %c0_i32_0 = arith.constant 0 : i32
    %c0_i32_1 = arith.constant 0 : i32
    return %c0_i32, %c0_i32_0 : i32, i32
  }
  func.func @transform_4(%arg0: i32) -> (i32, i32) {
    %c0_i32 = arith.constant 0 : i32
    %c0_i32_0 = arith.constant 0 : i32
    %c0_i32_1 = arith.constant 0 : i32
    return %c0_i32, %c0_i32_0 : i32, i32
  }
  func.func @transform_5(%arg0: i32) -> (i32, i32) {
    %c0_i32 = arith.constant 0 : i32
    %c0_i32_0 = arith.constant 0 : i32
    return %arg0, %c0_i32 : i32, i32
  }
}

</mosaic_0001>

<bundles_post_ra>
// kernel: tpu_custom_call.1
= control target key start
LH: loop header
LB: loop body
LE: loop exit
PB: predicated region body
PF: predicated region fallthrough
CT: control target
= control target key end

     0   :  { %10 = vsyncpa [#allocation3], 0  ;;  %s822_s0 = inlined_call_operand.hbm [shape: f32[8,16], index: 0, kind: input, shape index: {}]   ;;  %s823_s1 = inlined_call_operand.hbm [shape: f32[16,128], index: 1, kind: input, shape index: {}]   ;;  %s824_s2 = inlined_call_operand.hbm [shape: f32[128,128], index: 2, kind: input, shape index: {}]   ;;  %s825_s3 = inlined_call_operand.hbm [shape: f32[128,128], index: 3, kind: input, shape index: {}]   ;;  %s826_s4 = inlined_call_operand.vmem [shape: f32[3,128], index: 4, kind: input, shape index: {}]   ;;  %s827_s5 = inlined_call_operand.hbm [shape: f32[8,128], index: 5, kind: output, shape index: {}]  }
   0x1   :  { %11 = vsyncpa [#allocation6], 0 }
   0x2   :  { %12 = vsyncpa [#allocation9], 0 }
   0x3   :  { %13 = vsyncpa [#allocation4], 0  ;;  %s684_s18 = smov [#allocation5]   ;;  %s566_s22 = scalar_lea.hbm %s823_s1, 256 }
   0x4   :  { %s29_s19 = sshll.u32 %s684_s18, 4  ;;  %p567_p0 = scmp.ne.s32.totalorder %s823_s1, %s566_s22  ;;  %s30_s19 = int_to_ptr.vmem [resolvable:$true] %s29_s19 }
   0x5   :  { %p570_p1 = scmp.lt.u32.totalorder %s566_s22, %s823_s1 }
   0x7   :  { %p572_p2 = pnand %p570_p1, %p567_p0 }
   0x9   :  { %575 = shalt.err (!%p572_p2)
}
   0xa   :  { %s576_s27 = scalar_lea.vmem %s30_s19, 256  ;;  %p581_p4 = scmp.lt.s32.totalorder %s30_s19, %s30_s19 }
   0xb   :  { %p577_p3 = scmp.ne.s32.totalorder %s30_s19, %s576_s27  ;;  %p582_p5 = scmp.lt.s32.totalorder %s576_s27, %s576_s27 }
   0xd   :  { %p583_p6 = por %p582_p5, %p581_p4 }
   0xf   :  { %p584_p7 = pnand %p583_p6, %p577_p3 }
  0x11   :  { %587 = shalt.err (!%p584_p7)
}
  0x12   :  { %s685_s28 = smov 128   ;;  %s686_s29 = smov 8  }
  0x13   :  { %35 = dma.hbm_to_vmem [thread:$0]  %s823_s1, 256, %s30_s19, [#allocation6], %s685_s28, %s685_s28, %s686_s29  }
  0x14   :  { %s687_s7 = smov [#allocation2]   ;;  %s688_s9 = smov [#allocation7]  }
  0x15   :  { %s20_s8 = sshll.u32 %s687_s7, 4  ;;  %s41_s10 = sshll.u32 %s688_s9, 4  ;;  %s21_s8 = int_to_ptr.vmem [resolvable:$true] %s20_s8  ;;  %s42_s10 = int_to_ptr.vmem [resolvable:$true] %s41_s10 }
  0x16   :  { %s588_s13 = scalar_lea.hbm %s822_s0, 128 }
  0x17   :  { %p589_p8 = scmp.ne.s32.totalorder %s822_s0, %s588_s13  ;;  %p592_p9 = scmp.lt.u32.totalorder %s588_s13, %s822_s0 }
  0x19   :  { %p594_p10 = pnand %p592_p9, %p589_p8 }
  0x1b   :  { %597 = shalt.err (!%p594_p10)
}
  0x1c   :  { %s598_s1 = scalar_lea.vmem %s21_s8, 128  ;;  %p603_p12 = scmp.lt.s32.totalorder %s21_s8, %s21_s8 }
  0x1d   :  { %p599_p11 = scmp.ne.s32.totalorder %s21_s8, %s598_s1  ;;  %p604_p13 = scmp.lt.s32.totalorder %s598_s1, %s598_s1 }
  0x1f   :  { %p605_p0 = por %p604_p13, %p603_p12 }
  0x21   :  { %p606_p1 = pnand %p605_p0, %p599_p11 }
  0x23   :  { %609 = shalt.err (!%p606_p1)
}
  0x24   :  { %23 = dma.hbm_to_vmem [thread:$0]  %s822_s0, 128, %s21_s8, [#allocation3]  }
  0x25   :  { %s610_s22 = scalar_lea.hbm %s824_s2, 2048 }
  0x26   :  { %p611_p2 = scmp.ne.s32.totalorder %s824_s2, %s610_s22  ;;  %p614_p3 = scmp.lt.u32.totalorder %s610_s22, %s824_s2 }
  0x28   :  { %p616_p4 = pnand %p614_p3, %p611_p2 }
  0x2a   :  { %619 = shalt.err (!%p616_p4)
}
  0x2b   :  { %s620_s27 = scalar_lea.vmem %s42_s10, 2048  ;;  %p625_p6 = scmp.lt.s32.totalorder %s42_s10, %s42_s10 }
  0x2c   :  { %p621_p5 = scmp.ne.s32.totalorder %s42_s10, %s620_s27  ;;  %p626_p7 = scmp.lt.s32.totalorder %s620_s27, %s620_s27 }
  0x2e   :  { %p627_p8 = por %p626_p7, %p625_p6 }
  0x30   :  { %p628_p9 = pnand %p627_p8, %p621_p5 }
  0x32   :  { %631 = shalt.err (!%p628_p9)
}
  0x33   :  { %47 = dma.hbm_to_vmem [thread:$0]  %s824_s2, 2048, %s42_s10, [#allocation6], %s685_s28, %s685_s28, %s686_s29  }
  0x34   :  { %s689_s6 = smov [#allocation8]   ;;  %s632_s11 = scalar_lea.hbm %s825_s3, 2048 }
  0x35   :  { %s53_s7 = sshll.u32 %s689_s6, 4  ;;  %p633_p10 = scmp.ne.s32.totalorder %s825_s3, %s632_s11  ;;  %s54_s7 = int_to_ptr.vmem [resolvable:$true] %s53_s7 }
  0x36   :  { %p636_p11 = scmp.lt.u32.totalorder %s632_s11, %s825_s3 }
  0x38   :  { %p638_p12 = pnand %p636_p11, %p633_p10 }
  0x3a   :  { %641 = shalt.err (!%p638_p12)
}
  0x3b   :  { %s642_s16 = scalar_lea.vmem %s54_s7, 2048  ;;  %p647_p0 = scmp.lt.s32.totalorder %s54_s7, %s54_s7 }
  0x3c   :  { %p643_p13 = scmp.ne.s32.totalorder %s54_s7, %s642_s16  ;;  %p648_p1 = scmp.lt.s32.totalorder %s642_s16, %s642_s16 }
  0x3e   :  { %p649_p2 = por %p648_p1, %p647_p0 }
  0x40   :  { %p650_p3 = pnand %p649_p2, %p643_p13 }
  0x42   :  { %653 = shalt.err (!%p650_p3)
}
  0x43   :  { %59 = dma.hbm_to_vmem [thread:$0]  %s825_s3, 2048, %s54_s7, [#allocation9], %s685_s28, %s685_s28, %s686_s29  }
  0x44   :  { %676 = dma.done.wait [#allocation3], 128  }
  0x45   :  { %677 = vsyncadd [#allocation3], 4294967168 }
  0x46   :  { %678 = dma.done.wait [#allocation6], 2304  }
  0x47   :  { %679 = vsyncadd [#allocation6], 4294964992 }
  0x48   :  { %680 = dma.done.wait [#allocation9], 2048  }
  0x49   :  { %681 = vsyncadd [#allocation9], 4294965248  ;;  %v690_v0 = vmov 0.0|0.0   ;;  %vm691_vm0 = vmmov 0   ;;  %v692_v1 = vmov 0.0   ;;  %v78_v2 = vld [vmem:[#allocation5] sm:$0xff] }
  0x4a   :  { %499 = vmatprep.subr.bf16.mxu0 %v690_v0  ;;  %426 = vmatprep.mubr.msk.f32.mxu0 %vm691_vm0, %v692_v1  ;;  %v79_v3 = vld [vmem:[#allocation5 + $0x8] sm:$0xff]  ;;  %v159_v5 = vld [vmem:[#allocation7] sm:$0xff]  ;;  %v160_v6 = vld [vmem:[#allocation7 + $0x8] sm:$0xff]  ;;  %vm84_vm1 = vcmask 130048  }
  0x4b   :  { %502 = vmatprep.subr.bf16.mxu1 %v690_v0  ;;  %461 = vmatprep.mubr.msk.f32.mxu1 %vm691_vm0, %v692_v1  ;;  %v500_v4 = vpack.c.bf16 %v79_v3, %v78_v2  ;;  %v161_v7 = vld [vmem:[#allocation7 + $0x10] sm:$0xff]  ;;  %v503_v8 = vpack.c.bf16 %v160_v6, %v159_v5  ;;  %v162_v9 = vld [vmem:[#allocation7 + $0x18] sm:$0xff]  ;;  %v77_v10 = vld [vmem:[#allocation2] sm:$0xff] }
  0x4c   :  { %v506_v11 = vpack.c.bf16 %v162_v9, %v161_v7  ;;  %v163_v12 = vld [vmem:[#allocation7 + $0x20] sm:$0xff]  ;;  %v164_v13 = vld [vmem:[#allocation7 + $0x28] sm:$0xff]  ;;  %v165_v15 = vld [vmem:[#allocation7 + $0x30] sm:$0xff] }
  0x4d   :  { %501 = vmatpush3.bf16.msra.mxu0 %v500_v4  ;;  %504 = vmatpush3.bf16.msra.mxu1 %v503_v8  ;;  %v509_v14 = vpack.c.bf16 %v164_v13, %v163_v12  ;;  %v166_v16 = vld [vmem:[#allocation7 + $0x38] sm:$0xff]  ;;  %v167_v18 = vld [vmem:[#allocation7 + $0x40] sm:$0xff]  ;;  %v168_v19 = vld [vmem:[#allocation7 + $0x48] sm:$0xff] }
  0x4e   :  { %526 = vmatprep.subr.bf16.mxu0 %v690_v0  ;;  %505 = vmatprep.subr.bf16.mxu1 %v690_v0  ;;  %v512_v17 = vpack.c.bf16 %v166_v16, %v165_v15  ;;  %v515_v20 = vpack.c.bf16 %v168_v19, %v167_v18  ;;  %v169_v21 = vld [vmem:[#allocation7 + $0x50] sm:$0xff]  ;;  %v170_v22 = vld [vmem:[#allocation7 + $0x58] sm:$0xff]  ;;  %v171_v24 = vld [vmem:[#allocation7 + $0x60] sm:$0xff] }
  0x4f   :  { %v518_v23 = vpack.c.bf16 %v170_v22, %v169_v21  ;;  %v172_v25 = vld [vmem:[#allocation7 + $0x68] sm:$0xff]  ;;  %v173_v27 = vld [vmem:[#allocation7 + $0x70] sm:$0xff]  ;;  %v174_v28 = vld [vmem:[#allocation7 + $0x78] sm:$0xff] }
  0x50   :  { %427 = vmatmul.mubr.msk.f32.vlgmr.msra.gmra.mrb[0].mxu0 %vm84_vm1, %v77_v10  ;;  %v521_v26 = vpack.c.bf16 %v172_v25, %v171_v24  ;;  %v524_v29 = vpack.c.bf16 %v174_v28, %v173_v27  ;;  %v250_v30 = vld [vmem:[#allocation8] sm:$0xff]  ;;  %v251_v31 = vld [vmem:[#allocation8 + $0x8] sm:$0xff]  ;;  %v252_v32 = vld [vmem:[#allocation8 + $0x10] sm:$0xff]  ;;  %v340_v10 = vlaneseq }
  0x51   :  { %496 = vmatprep.mubr.msk.f32.mxu0 %vm691_vm0, %v692_v1  ;;  %507 = vmatpush3.bf16.msra.mxu1 %v506_v11  ;;  %v527_v33 = vpack.c.bf16 %v251_v31, %v250_v30  ;;  %v253_v34 = vld [vmem:[#allocation8 + $0x18] sm:$0xff]  ;;  %v254_v36 = vld [vmem:[#allocation8 + $0x20] sm:$0xff]  ;;  %v255_v37 = vld [vmem:[#allocation8 + $0x28] sm:$0xff] }
  0x52   :  { %508 = vmatprep.subr.bf16.mxu1 %v690_v0  ;;  %v530_v35 = vpack.c.bf16 %v253_v34, %v252_v32  ;;  %v533_v38 = vpack.c.bf16 %v255_v37, %v254_v36  ;;  %v256_v39 = vld [vmem:[#allocation8 + $0x30] sm:$0xff]  ;;  %v257_v40 = vld [vmem:[#allocation8 + $0x38] sm:$0xff]  ;;  %v258_v42 = vld [vmem:[#allocation8 + $0x40] sm:$0xff] }
  0x53   :  { %528 = vmatpush3.bf16.msra.mxu0 %v527_v33  ;;  %v536_v41 = vpack.c.bf16 %v257_v40, %v256_v39  ;;  %v259_v43 = vld [vmem:[#allocation8 + $0x48] sm:$0xff]  ;;  %v260_v45 = vld [vmem:[#allocation8 + $0x50] sm:$0xff]  ;;  %v261_v46 = vld [vmem:[#allocation8 + $0x58] sm:$0xff] }
  0x54   :  { %529 = vmatprep.subr.bf16.mxu0 %v690_v0  ;;  %v539_v44 = vpack.c.bf16 %v259_v43, %v258_v42  ;;  %v542_v47 = vpack.c.bf16 %v261_v46, %v260_v45  ;;  %v262_v48 = vld [vmem:[#allocation8 + $0x60] sm:$0xff]  ;;  %v263_v49 = vld [vmem:[#allocation8 + $0x68] sm:$0xff]  ;;  %v264_v56 = vld [vmem:[#allocation8 + $0x70] sm:$0xff] }
  0x55   :  { %510 = vmatpush3.bf16.msra.mxu1 %v509_v14  ;;  %v545_v50 = vpack.c.bf16 %v263_v49, %v262_v48  ;;  %v381_v51 = vld [vmem:[%s826_s4] ss:$0 sm:$0xff]  ;;  %v265_v57 = vld [vmem:[#allocation8 + $0x78] sm:$0xff]  ;;  %v383_v59 = vld [vmem:[%s826_s4 + $0x1] ss:$0 sm:$0xff]  ;;  %v341_v14 = vand.u32 127, %v340_v10 }
  0x56   :  { %511 = vmatprep.subr.bf16.mxu1 %v690_v0  ;;  %v548_v58 = vpack.c.bf16 %v265_v57, %v264_v56 }
  0x57   :  { %531 = vmatpush3.bf16.msra.mxu0 %v530_v35  ;;  %vm360_vm3 = vcmp.lt.s32.totalorder %v341_v14, 16  ;;  %vm359_vm4 = vcmp.lt.s32.totalorder %v341_v14, 8 }
  0x58   :  { %532 = vmatprep.subr.bf16.mxu0 %v690_v0 }
  0x59   :  { %513 = vmatpush3.bf16.msra.mxu1 %v512_v17 }
  0x5a   :  { %514 = vmatprep.subr.bf16.mxu1 %v690_v0 }
  0x5b   :  { %534 = vmatpush3.bf16.msra.mxu0 %v533_v38 }
  0x5c   :  { %535 = vmatprep.subr.bf16.mxu0 %v690_v0 }
  0x5d   :  { %516 = vmatpush3.bf16.msra.mxu1 %v515_v20 }
  0x5e   :  { %517 = vmatprep.subr.bf16.mxu1 %v690_v0 }
  0x5f   :  { %537 = vmatpush3.bf16.msra.mxu0 %v536_v41 }
  0x60   :  { %538 = vmatprep.subr.bf16.mxu0 %v690_v0 }
  0x61   :  { %519 = vmatpush3.bf16.msra.mxu1 %v518_v23 }
  0x62   :  { %520 = vmatprep.subr.bf16.mxu1 %v690_v0 }
  0x63   :  { %540 = vmatpush3.bf16.msra.mxu0 %v539_v44 }
  0x64   :  { %541 = vmatprep.subr.bf16.mxu0 %v690_v0 }
  0x65   :  { %522 = vmatpush3.bf16.msra.mxu1 %v521_v26 }
  0x66   :  { %523 = vmatprep.subr.bf16.mxu1 %v690_v0 }
  0x67   :  { %543 = vmatpush3.bf16.msra.mxu0 %v542_v47 }
  0x68   :  { %544 = vmatprep.subr.bf16.mxu0 %v690_v0 }
  0x69   :  { %525 = vmatpush3.bf16.msra.mxu1 %v524_v29 }
  0x6b   :  { %546 = vmatpush3.bf16.msra.mxu0 %v545_v50 }
  0x6c   :  { %547 = vmatprep.subr.bf16.mxu0 %v690_v0  ;;  %v384_v0 = vld [vmem:[%s826_s4 + $0x2] ss:$0 sm:$0xff]  ;;  %s693_s4 = smov [#allocation10]  }
  0x6d   :  { %s370_s19 = sshll.u32 %s693_s4, 4  ;;  %s371_s19 = int_to_ptr.vmem [resolvable:$true] %s370_s19 }
  0x6e   :  { %s654_s20 = scalar_lea.vmem %s371_s19, 128  ;;  %p659_p5 = scmp.lt.s32.totalorder %s371_s19, %s371_s19 }
  0x6f   :  { %549 = vmatpush3.bf16.msra.mxu0 %v548_v58  ;;  %p655_p4 = scmp.ne.s32.totalorder %s371_s19, %s654_s20  ;;  %p660_p6 = scmp.lt.s32.totalorder %s654_s20, %s654_s20 }
  0x71   :  { %p661_p7 = por %p660_p6, %p659_p5 }
  0x73   :  { %p662_p8 = pnand %p661_p7, %p655_p4 }
 0x123   :  { %v154_v52 = vpop.f32.mrb[0].mxu0 }
 0x124   :  { %v155_v53 = vadd.f32 %v381_v51, %v154_v52  ;;  %v428_v54 = vpop.f32.mrb[1].mxu0 }
 0x126   :  { %v158_v55 = vmax.f32 %v155_v53, 0.0 }
 0x128   :  { %462 = vmatmul.mubr.f32.vlgmr.msra.gmra.mrb[0].mxu1 %v158_v55 }
 0x1fb   :  { %v245_v60 = vpop.f32.mrb[0].mxu1 }
 0x1fc   :  { %v246_v61 = vadd.f32 %v383_v59, %v245_v60  ;;  %v463_v62 = vpop.f32.mrb[1].mxu1 }
 0x1fe   :  { %v249_v63 = vmax.f32 %v246_v61, 0.0 }
 0x200   :  { %497 = vmatmul.mubr.f32.vlgmr.msra.gmra.mrb[2].mxu0 %v249_v63 }
 0x2d3   :  { %v336_v1 = vpop.f32.mrb[2].mxu0 }
 0x2d4   :  { %v337_v2 = vadd.f32 %v384_v0, %v336_v1  ;;  %v498_v3 = vpop.f32.mrb[3].mxu0 }
 0x2d6   :  { %v343_v4 = vand.u32 2147483647, %v337_v2  ;;  %v356_v17 = vmax.f32 %v337_v2, 0.0 }
 0x2d8   :  { %v344_v5 = vsub.f32 0.0, %v343_v4 }
 0x2da   :  { %v345_v6 = vmul.f32 1.442695, %v344_v5 }
 0x2dc   :  { %560 = vpow2.f32 %v345_v6 }
 0x2e6   :  { %v561_v7 = vpop.eup %560 }
 0x2e7   :  { %v347_v8 = vadd.f32 1.0, %v561_v7  ;;  %v350_v9 = vmul.f32 -0.5, %v561_v7  ;;  %v353_v12 = vand.u32 2147483647, %v561_v7 }
 0x2e9   :  { %562 = vlog2.f32 %v347_v8  ;;  %v351_v11 = vadd.f32 1.0, %v350_v9  ;;  %vm354_vm2 = vcmp.lt.f32.partialorder %v353_v12, 0.0004427343 }
 0x2ea   :  { %564 = vtanh.f32 %v337_v2 }
 0x2eb   :  { %v352_v16 = vmul.f32 %v561_v7, %v351_v11 }
 0x2f3   :  { %v563_v13 = vpop.eup %562 }
 0x2f4   :  { %v349_v15 = vmul.f32 0.6931472, %v563_v13  ;;  %v565_v21 = vpop.eup %564 }
 0x2f6   :  { %v355_v18 = vsel %vm354_vm2, %v352_v16, %v349_v15 }
 0x2f7   :  { %v357_v19 = vadd.f32 %v356_v17, %v355_v18 }
 0x2f9   :  { %v358_v20 = vadd.f32 0.001, %v357_v19 }
 0x2fb   :  { %v361_v22 = vsel %vm360_vm3, %v358_v20, %v337_v2 }
 0x2fc   :  { %v362_v23 = vsel %vm359_vm4, %v565_v21, %v361_v22 }
 0x2fd   :  { %363 = vst [vmem:[#allocation10] sm:$0xff] %v362_v23 }
 0x2fe   :  { %665 = shalt.err (!%p662_p8)
}
 0x2ff   :  { %s666_s23 = scalar_lea.hbm %s827_s5, 128 }
 0x300   :  { %p667_p9 = scmp.ne.s32.totalorder %s827_s5, %s666_s23  ;;  %p670_p10 = scmp.lt.u32.totalorder %s666_s23, %s827_s5 }
 0x302   :  { %p672_p11 = pnand %p670_p10, %p667_p9 }
 0x304   :  { %675 = shalt.err (!%p672_p11)
}
 0x305   :  { %373 = dma.vmem_to_hbm [thread:$0]  %s371_s19, 128, %s827_s5, [#allocation4]  }
 0x306   :  { %682 = dma.done.wait [#allocation4], 128  }
 0x307   :  { %683 = vsyncadd [#allocation4], 4294967168 }
 0x308   :  { %377 = vsyncpa [#allocation3], 1 }
 0x309   :  { %378 = vsyncpa [#allocation6], 1 }
 0x30a   :  { %379 = vsyncpa [#allocation9], 1 }
 0x30b   :  { %380 = vsyncpa [#allocation4], 1 }

</bundles_post_ra>
